<compile_context>
chip_gen: v7x
topology: tpu7x:2x2x1
jax: 0.10.0
libtpu: 0.0.40
codegen_flags: <defaults>
</compile_context>

<pallas_src>
import functools

import jax
import jax.numpy as jnp
import numpy as np
from jax import lax
from jax.experimental import pallas as pl
from jax.experimental.pallas import tpu as pltpu

LEAK = 0.2


# ----------------------------------------------------------------------------
# Pallas kernel: one (batch, L-tile) grid point of the whole DilatedBlock
# ----------------------------------------------------------------------------
def _dilated_block_kernel(dilation, tl,
                          xpad_ref, xres_ref, w1_ref, b1_ref, w2_ref, b2_ref,
                          o_ref):
    """Refs (batch dim squeezed out via block_shape=None):

    xpad_ref : (L + 2*dilation, C)  zero-padded sequence, resident per batch
    xres_ref : (tl, C)              residual tile (original, unpadded)
    w1_ref   : (3, C, C)            dilated-conv taps, (tap, C_in, C_out)
    b1_ref   : (1, C)
    w2_ref   : (C, C)               1x1 conv, (C_in, C_out)
    b2_ref   : (1, C)
    o_ref    : (tl, C)
    """
    d = dilation
    j = pl.program_id(1)
    base = pl.multiple_of(j * tl, tl)           # tl-aligned dynamic start

    # Load the tile plus its 2*d halo once; the three taps are static slices
    # of that window (no im2col / patch matrix is ever materialized).
    win = xpad_ref[pl.ds(base, tl + 2 * d), :]          # (tl + 2d, C)

    # Dilated 3-tap conv as three accumulated MXU matmuls (f32 accumulation).
    h = jnp.dot(win[0:tl], w1_ref[0], preferred_element_type=jnp.float32)
    h = h + jnp.dot(win[d:d + tl], w1_ref[1], preferred_element_type=jnp.float32)
    h = h + jnp.dot(win[2 * d:2 * d + tl], w1_ref[2],
                    preferred_element_type=jnp.float32)
    h = h + b1_ref[...]

    # 1x1 conv (no activation between the two convs — matches the reference).
    h = jnp.dot(h, w2_ref[...], preferred_element_type=jnp.float32)
    h = h + b2_ref[...]

    # Residual + leaky_relu(0.2).
    h = h + xres_ref[...]
    o_ref[...] = jnp.where(h > 0.0, h, LEAK * h).astype(o_ref.dtype)


# ----------------------------------------------------------------------------
# Wrapper
# ----------------------------------------------------------------------------
@functools.partial(jax.jit, static_argnames=("dilation", "tl"))
def dilated_block(x_ncl, w_dil, b_dil, w_1x1, b_1x1, *, dilation, tl=None):
    """DilatedBlock forward.

    x_ncl : (B, C, L) float32, NCL layout like the PyTorch module.
    w_dil : (C, C, 3) PyTorch Conv1d weight layout (C_out, C_in, K).
    b_dil : (C,)
    w_1x1 : (C, C, 1)
    b_1x1 : (C,)
    """
    B, C, L = x_ncl.shape
    d = int(dilation)

    # Tile size along L: big enough to amortize per-step overhead, small enough
    # that (tile + weights) double-buffered stays far below the scoped VMEM
    # limit on every generation (v7x included).
    if tl is None:
        tl = min(L, 256)
    if L % tl != 0:
        tl = L                       # ragged L: fall back to one full-L tile
    n_l = L // tl

    # Channels-last internally (matmul-friendly, lane-dense in C); only a
    # 2*dilation-row zero halo is padded (replaces the 3x im2col expansion).
    x_blc = jnp.transpose(x_ncl, (0, 2, 1)).astype(jnp.float32)   # (B, L, C)
    x_pad = jnp.pad(x_blc, ((0, 0), (d, d), (0, 0)))              # (B, L+2d, C)
    L_pad = L + 2 * d

    # Weights -> (tap, C_in, C_out) / (C_in, C_out) so the kernel does x @ w.
    w1 = jnp.transpose(w_dil.astype(jnp.float32), (2, 1, 0))      # (3, C, C)
    w2 = jnp.transpose(w_1x1.astype(jnp.float32)[:, :, 0], (1, 0))  # (C, C)
    b1 = b_dil.reshape(1, C).astype(jnp.float32)
    b2 = b_1x1.reshape(1, C).astype(jnp.float32)

    kernel = functools.partial(_dilated_block_kernel, d, tl)

    out = pl.pallas_call(
        kernel,
        out_shape=jax.ShapeDtypeStruct((B, L, C), jnp.float32),
        grid=(B, n_l),
        in_specs=[
            # padded sequence: resident across the inner L loop (index only
            # depends on b -> fetched once per batch)
            pl.BlockSpec((None, L_pad, C), lambda b, j: (b, 0, 0)),
            # residual tile
            pl.BlockSpec((None, tl, C), lambda b, j: (b, j, 0)),
            # weights/biases: constant index -> stay in VMEM for the whole grid
            pl.BlockSpec((3, C, C), lambda b, j: (0, 0, 0)),
            pl.BlockSpec((1, C), lambda b, j: (0, 0)),
            pl.BlockSpec((C, C), lambda b, j: (0, 0)),
            pl.BlockSpec((1, C), lambda b, j: (0, 0)),
        ],
        out_specs=pl.BlockSpec((None, tl, C), lambda b, j: (b, j, 0)),
        compiler_params=pltpu.CompilerParams(
            dimension_semantics=("parallel", "parallel")),
    )(x_pad, x_blc, w1, b1, w2, b2)

    return jnp.transpose(out, (0, 2, 1))        # back to NCL


# ----------------------------------------------------------------------------
# Pure-JAX reference (for correctness check)
# ----------------------------------------------------------------------------
def dilated_block_ref(x, w_dil, b_dil, w_1x1, b_1x1, dilation):
    dn = lax.conv_dimension_numbers(x.shape, w_dil.shape, ("NCH", "OIH", "NCH"))
    h = lax.conv_general_dilated(
        x, w_dil, window_strides=(1,), padding=[(dilation, dilation)],
        rhs_dilation=(dilation,), dimension_numbers=dn,
        precision=lax.Precision.HIGHEST) + b_dil[None, :, None]
    dn1 = lax.conv_dimension_numbers(h.shape, w_1x1.shape, ("NCH", "OIH", "NCH"))
    h = lax.conv_general_dilated(
        h, w_1x1, window_strides=(1,), padding=[(0, 0)],
        dimension_numbers=dn1,
        precision=lax.Precision.HIGHEST) + b_1x1[None, :, None]
    h = h + x
    return jnp.where(h > 0, h, LEAK * h)


# ----------------------------------------------------------------------------
if __name__ == "__main__":
    key = jax.random.PRNGKey(0)
    # Small but representative: C = 128 (the experiment's model_dim) keeps the
    # output lane-dense; grid = (B, L/tl) = (2, 4) gives >= 2 parallel points.
    B, C, L = 2, 128, 512
    TL = 128

    k_x, k_w = jax.random.split(key)
    x = jax.random.normal(k_x, (B, C, L), jnp.float32)

    for dil in (1, 3, 9):   # dilations used by the experiment's decoder stack
        kd = jax.random.fold_in(k_w, dil)
        k1, k2, k3, k4 = jax.random.split(kd, 4)
        w_dil = jax.random.uniform(k1, (C, C, 3), jnp.float32, -0.05, 0.05)
        b_dil = jax.random.uniform(k2, (C,), jnp.float32, -0.05, 0.05)
        w_1x1 = jax.random.uniform(k3, (C, C, 1), jnp.float32, -0.05, 0.05)
        b_1x1 = jax.random.uniform(k4, (C,), jnp.float32, -0.05, 0.05)

        out = dilated_block(x, w_dil, b_dil, w_1x1, b_1x1, dilation=dil, tl=TL)
        out = jax.block_until_ready(out)
        assert out.shape == (B, C, L)

        ref = dilated_block_ref(x, w_dil, b_dil, w_1x1, b_1x1, dil)
        np.testing.assert_allclose(np.asarray(out), np.asarray(ref),
                                   atol=2e-3, rtol=2e-3)

    print("KERNEL_OK")
</pallas_src>

<mosaic_0001>
module attributes {stable_mosaic.version = 11 : i64} {
  func.func @_dilated_block_kernel(%arg0: i32, %arg1: i32, %arg2: memref<1x514x128xf32, #tpu.memory_space<vmem>>, %arg3: memref<1x128x128xf32, #tpu.memory_space<vmem>>, %arg4: memref<3x128x128xf32, #tpu.memory_space<vmem>>, %arg5: memref<1x128xf32, #tpu.memory_space<vmem>>, %arg6: memref<128x128xf32, #tpu.memory_space<vmem>>, %arg7: memref<1x128xf32, #tpu.memory_space<vmem>>, %arg8: memref<1x128x128xf32, #tpu.memory_space<vmem>>) attributes {dimension_semantics = [#tpu.dimension_semantics<parallel>, #tpu.dimension_semantics<parallel>], iteration_bounds = array<i64: 2, 4>, scalar_prefetch = 0 : i64, scratch_operands = 0 : i64, tpu.core_type = #tpu.core_type<tc>, window_params = [{transform_indices = @transform_0, window_bounds = array<i64: 1, 514, 128>}, {transform_indices = @transform_1, window_bounds = array<i64: 1, 128, 128>}, {pipeline_mode = #tpu.pipeline_mode<synchronous>, transform_indices = @transform_2, window_bounds = array<i64: 3, 128, 128>}, {pipeline_mode = #tpu.pipeline_mode<synchronous>, transform_indices = @transform_3, window_bounds = array<i64: 1, 128>}, {pipeline_mode = #tpu.pipeline_mode<synchronous>, transform_indices = @transform_4, window_bounds = array<i64: 128, 128>}, {pipeline_mode = #tpu.pipeline_mode<synchronous>, transform_indices = @transform_5, window_bounds = array<i64: 1, 128>}, {transform_indices = @transform_6, window_bounds = array<i64: 1, 128, 128>}]} {
    %c128_i32 = arith.constant 128 : i32
    %0 = arith.muli %arg1, %c128_i32 : i32
    %1 = tpu.assume_multiple %0, 128 : i32
    %c0 = arith.constant 0 : index
    %2 = arith.index_cast %1 : i32 to index
    %c0_0 = arith.constant 0 : index
    %3 = vector.load %arg2[%c0, %2, %c0_0] : memref<1x514x128xf32, #tpu.memory_space<vmem>>, vector<1x130x128xf32>
    %4 = vector.shape_cast %3 : vector<1x130x128xf32> to vector<130x128xf32>
    %5 = vector.extract_strided_slice %4 {offsets = [0, 0], sizes = [128, 128], strides = [1, 1]} : vector<130x128xf32> to vector<128x128xf32>
    %c0_1 = arith.constant 0 : index
    %c0_2 = arith.constant 0 : index
    %c0_3 = arith.constant 0 : index
    %6 = vector.load %arg4[%c0_1, %c0_2, %c0_3] : memref<3x128x128xf32, #tpu.memory_space<vmem>>, vector<1x128x128xf32>
    %7 = vector.shape_cast %6 : vector<1x128x128xf32> to vector<128x128xf32>
    %cst = arith.constant dense<0.000000e+00> : vector<128x128xf32>
    %8 = tpu.matmul %5, %7, %cst {dimension_numbers = #tpu.dot_dimension_numbers<[1], [0], [0], [1], [0, 0, 1, 1], [], []>} : vector<128x128xf32>, vector<128x128xf32>, vector<128x128xf32> -> vector<128x128xf32>
    %9 = vector.extract_strided_slice %4 {offsets = [1, 0], sizes = [128, 128], strides = [1, 1]} : vector<130x128xf32> to vector<128x128xf32>
    %c1 = arith.constant 1 : index
    %c0_4 = arith.constant 0 : index
    %c0_5 = arith.constant 0 : index
    %10 = vector.load %arg4[%c1, %c0_4, %c0_5] : memref<3x128x128xf32, #tpu.memory_space<vmem>>, vector<1x128x128xf32>
    %11 = vector.shape_cast %10 : vector<1x128x128xf32> to vector<128x128xf32>
    %cst_6 = arith.constant dense<0.000000e+00> : vector<128x128xf32>
    %12 = tpu.matmul %9, %11, %cst_6 {dimension_numbers = #tpu.dot_dimension_numbers<[1], [0], [0], [1], [0, 0, 1, 1], [], []>} : vector<128x128xf32>, vector<128x128xf32>, vector<128x128xf32> -> vector<128x128xf32>
    %13 = arith.addf %8, %12 : vector<128x128xf32>
    %14 = vector.extract_strided_slice %4 {offsets = [2, 0], sizes = [128, 128], strides = [1, 1]} : vector<130x128xf32> to vector<128x128xf32>
    %c2 = arith.constant 2 : index
    %c0_7 = arith.constant 0 : index
    %c0_8 = arith.constant 0 : index
    %15 = vector.load %arg4[%c2, %c0_7, %c0_8] : memref<3x128x128xf32, #tpu.memory_space<vmem>>, vector<1x128x128xf32>
    %16 = vector.shape_cast %15 : vector<1x128x128xf32> to vector<128x128xf32>
    %cst_9 = arith.constant dense<0.000000e+00> : vector<128x128xf32>
    %17 = tpu.matmul %14, %16, %cst_9 {dimension_numbers = #tpu.dot_dimension_numbers<[1], [0], [0], [1], [0, 0, 1, 1], [], []>} : vector<128x128xf32>, vector<128x128xf32>, vector<128x128xf32> -> vector<128x128xf32>
    %18 = arith.addf %13, %17 : vector<128x128xf32>
    %c0_10 = arith.constant 0 : index
    %c0_11 = arith.constant 0 : index
    %19 = vector.load %arg5[%c0_10, %c0_11] : memref<1x128xf32, #tpu.memory_space<vmem>>, vector<1x128xf32>
    %20 = vector.broadcast %19 : vector<1x128xf32> to vector<128x128xf32>
    %21 = arith.addf %18, %20 : vector<128x128xf32>
    %c0_12 = arith.constant 0 : index
    %c0_13 = arith.constant 0 : index
    %22 = vector.load %arg6[%c0_12, %c0_13] : memref<128x128xf32, #tpu.memory_space<vmem>>, vector<128x128xf32>
    %cst_14 = arith.constant dense<0.000000e+00> : vector<128x128xf32>
    %23 = tpu.matmul %21, %22, %cst_14 {dimension_numbers = #tpu.dot_dimension_numbers<[1], [0], [0], [1], [0, 0, 1, 1], [], []>} : vector<128x128xf32>, vector<128x128xf32>, vector<128x128xf32> -> vector<128x128xf32>
    %c0_15 = arith.constant 0 : index
    %c0_16 = arith.constant 0 : index
    %24 = vector.load %arg7[%c0_15, %c0_16] : memref<1x128xf32, #tpu.memory_space<vmem>>, vector<1x128xf32>
    %25 = vector.broadcast %24 : vector<1x128xf32> to vector<128x128xf32>
    %26 = arith.addf %23, %25 : vector<128x128xf32>
    %c0_17 = arith.constant 0 : index
    %c0_18 = arith.constant 0 : index
    %c0_19 = arith.constant 0 : index
    %27 = vector.load %arg3[%c0_17, %c0_18, %c0_19] : memref<1x128x128xf32, #tpu.memory_space<vmem>>, vector<1x128x128xf32>
    %28 = vector.shape_cast %27 : vector<1x128x128xf32> to vector<128x128xf32>
    %29 = arith.addf %26, %28 : vector<128x128xf32>
    %cst_20 = arith.constant 0.000000e+00 : f32
    %30 = vector.broadcast %cst_20 : f32 to vector<128x128xf32>
    %31 = arith.cmpf ogt, %29, %30 : vector<128x128xf32>
    %cst_21 = arith.constant 2.000000e-01 : f32
    %32 = vector.broadcast %cst_21 : f32 to vector<128x128xf32>
    %33 = arith.mulf %32, %29 : vector<128x128xf32>
    %34 = arith.select %31, %29, %33 : vector<128x128xi1>, vector<128x128xf32>
    %c0_22 = arith.constant 0 : index
    %c0_23 = arith.constant 0 : index
    %c0_24 = arith.constant 0 : index
    %35 = vector.load %arg8[%c0_22, %c0_23, %c0_24] : memref<1x128x128xf32, #tpu.memory_space<vmem>>, vector<1x128x128xf32>
    %36 = vector.shape_cast %35 : vector<1x128x128xf32> to vector<128x128xf32>
    %37 = vector.shape_cast %34 : vector<128x128xf32> to vector<1x128x128xf32>
    tpu.vector_store %arg8[%c0_22, %c0_23, %c0_24], %37 {strides = array<i32>} : memref<1x128x128xf32, #tpu.memory_space<vmem>>, vector<1x128x128xf32>,
    return
  }
  func.func @transform_0(%arg0: i32, %arg1: i32) -> (i32, i32, i32) {
    %c0_i32 = arith.constant 0 : i32
    %c0_i32_0 = arith.constant 0 : i32
    %c0_i32_1 = arith.constant 0 : i32
    return %arg0, %c0_i32, %c0_i32_0 : i32, i32, i32
  }
  func.func @transform_1(%arg0: i32, %arg1: i32) -> (i32, i32, i32) {
    %c0_i32 = arith.constant 0 : i32
    %c0_i32_0 = arith.constant 0 : i32
    return %arg0, %arg1, %c0_i32 : i32, i32, i32
  }
  func.func @transform_2(%arg0: i32, %arg1: i32) -> (i32, i32, i32) {
    %c0_i32 = arith.constant 0 : i32
    %c0_i32_0 = arith.constant 0 : i32
    %c0_i32_1 = arith.constant 0 : i32
    %c0_i32_2 = arith.constant 0 : i32
    return %c0_i32, %c0_i32_0, %c0_i32_1 : i32, i32, i32
  }
  func.func @transform_3(%arg0: i32, %arg1: i32) -> (i32, i32) {
    %c0_i32 = arith.constant 0 : i32
    %c0_i32_0 = arith.constant 0 : i32
    %c0_i32_1 = arith.constant 0 : i32
    return %c0_i32, %c0_i32_0 : i32, i32
  }
  func.func @transform_4(%arg0: i32, %arg1: i32) -> (i32, i32) {
    %c0_i32 = arith.constant 0 : i32
    %c0_i32_0 = arith.constant 0 : i32
    %c0_i32_1 = arith.constant 0 : i32
    return %c0_i32, %c0_i32_0 : i32, i32
  }
  func.func @transform_5(%arg0: i32, %arg1: i32) -> (i32, i32) {
    %c0_i32 = arith.constant 0 : i32
    %c0_i32_0 = arith.constant 0 : i32
    %c0_i32_1 = arith.constant 0 : i32
    return %c0_i32, %c0_i32_0 : i32, i32
  }
  func.func @transform_6(%arg0: i32, %arg1: i32) -> (i32, i32, i32) {
    %c0_i32 = arith.constant 0 : i32
    %c0_i32_0 = arith.constant 0 : i32
    return %arg0, %arg1, %c0_i32 : i32, i32, i32
  }
}

</mosaic_0001>

<bundles_post_ra>
// kernel: dilated_block.1
= control target key start
LH: loop header
LB: loop body
LE: loop exit
PB: predicated region body
PF: predicated region fallthrough
CT: control target
= control target key end

     0   :  { %s2016_s21 = smov 0   ;;  %s2018_s22 = smov 0   ;;  %s2469_s0 = inlined_call_operand.vmem [shape: f32[2,514,128], index: 0, kind: input, shape index: {}]   ;;  %s2470_s1 = inlined_call_operand.vmem [shape: f32[2,512,128], index: 1, kind: input, shape index: {}]   ;;  %s2471_s2 = inlined_call_operand.vmem [shape: f32[3,128,128], index: 2, kind: input, shape index: {}]   ;;  %s2472_s3 = inlined_call_operand.vmem [shape: f32[1,128], index: 3, kind: input, shape index: {}]   ;;  %s2473_s4 = inlined_call_operand.vmem [shape: f32[128,128], index: 4, kind: input, shape index: {}]   ;;  %s2474_s5 = inlined_call_operand.vmem [shape: f32[1,128], index: 5, kind: input, shape index: {}]   ;;  %s2475_s6 = inlined_call_operand.vmem [shape: f32[2,512,128], index: 6, kind: output, shape index: {}]  }
   0x1   :  { %s2020_s23 = smov 0   ;;  %s2022_s24 = smov 0  }
   0x2   :  { %s2024_s25 = smov 0  }
   0x3 LB: > { %s25_s26 = sadd.s32 1, %s1971_s23  ;;  %s28_s27 = sadd.s32 1, %s1975_s24  ;;  %s1979_s25 = sphi %s2024_s25, %s16_s25   ;;  %s1975_s24 = sphi %s2022_s24, %s2479_s24   ;;  %s1971_s23 = sphi %s2020_s23, %s2478_s23   ;;  %s1967_s22 = sphi %s2018_s22, %s2477_s22   ;;  %s1963_s21 = sphi %s2016_s21, %s2476_s21  }
   0x4   : > { %p26_p0 = scmp.ge.s32.totalorder %s25_s26, 4  ;;  %p1343_p1 = scmp.ge.s32.totalorder %s1979_s25, 1 }
   0x5   : > { %p243_p2 = scmp.lt.s32.totalorder %s1979_s25, 9 }
   0x6   : > { %s2481_s26 = smov (%p26_p0, %s25_s26), 0  ;;  %s2483_s27 = smov (!%p26_p0, %s28_s27), %s1975_s24 }
   0x7   : > { %p244_p3 = pnand %p1343_p1, %p243_p2  ;;  %p30_p4 = scmp.ge.s32.totalorder %s2483_s27, 2 }
   0x8   : > { %v330_v0 = vld [vmem:[%s2471_s2] sm:$0xff] (!%p244_p3)  ;;  %v331_v1 = vld [vmem:[%s2471_s2 + $0x8] sm:$0xff] (!%p244_p3)  ;;  %v332_v2 = vld [vmem:[%s2471_s2 + $0x10] sm:$0xff] (!%p244_p3)  ;;  %p286_p5 = scmp.lt.s32.totalorder (!%p244_p3), %s1967_s22, 1  ;;  %s1351_s17 = sshll.u32 (!%p244_p3), %s1963_s21, 7  ;;  %vm380_vm0 = vcmask (!%p244_p3), 1046528  }
   0x9   : > { %s2485_s27 = smov (%p30_p4, %s2483_s27), 0  ;;  %247 = sbr.rel (%p244_p3) target bundleno = 543 (0x21f), region = 44 }
   0xa   : > { %v1772_v3 = vpack.c.bf16 (!%p244_p3), %v331_v1, %v330_v0  ;;  %v333_v4 = vld [vmem:[%s2471_s2 + $0x18] sm:$0xff] (!%p244_p3)  ;;  %v334_v6 = vld [vmem:[%s2471_s2 + $0x20] sm:$0xff] (!%p244_p3)  ;;  %v335_v7 = vld [vmem:[%s2471_s2 + $0x28] sm:$0xff] (!%p244_p3)  ;;  %vm737_vm1 = vcmask (!%p244_p3), 1045504   ;;  %s1345_s9 = sshll.u32 (!%p244_p3), %s1963_s21, 4 }
   0xb   : > { %v1776_v5 = vpack.c.bf16 (!%p244_p3), %v333_v4, %v332_v2  ;;  %v1780_v8 = vpack.c.bf16 (!%p244_p3), %v335_v7, %v334_v6  ;;  %v1352_v9 = vld [vmem:[%s2471_s2 + $0x80] sm:$0xff] (!%p244_p3)  ;;  %v1353_v10 = vld [vmem:[%s2471_s2 + $0x88] sm:$0xff] (!%p244_p3)  ;;  %v336_v11 = vld [vmem:[%s2471_s2 + $0x30] sm:$0xff] (!%p244_p3)  ;;  %p294_p6 = scmp.lt.s32.totalorder (!%p244_p3), %s1345_s9, 63 }
   0xc   : > { %1773 = vmatprep.subr.bf16.mxu0 (!%p244_p3), %v1772_v3  ;;  %v337_v12 = vld [vmem:[%s2471_s2 + $0x38] sm:$0xff] (!%p244_p3)  ;;  %v1740_v13 = vpack.c.bf16 (!%p244_p3), %v1353_v10, %v1352_v9  ;;  %v1354_v14 = vld [vmem:[%s2471_s2 + $0x90] sm:$0xff] (!%p244_p3)  ;;  %v338_v20 = vld [vmem:[%s2471_s2 + $0x40] sm:$0xff] (!%p244_p3) }
   0xd   : > { %1775 = vmatpush3.bf16.msra.mxu0 (!%p244_p3), %v1772_v3  ;;  %v1355_v15 = vld [vmem:[%s2471_s2 + $0x98] sm:$0xff] (!%p244_p3)  ;;  %v1784_v19 = vpack.c.bf16 (!%p244_p3), %v337_v12, %v336_v11  ;;  %v339_v23 = vld [vmem:[%s2471_s2 + $0x48] sm:$0xff] (!%p244_p3)  ;;  %v1356_v24 = vld [vmem:[%s2471_s2 + $0xa0] sm:$0xff] (!%p244_p3) }
   0xe   : > { %1777 = vmatprep.subr.bf16.mxu0 (!%p244_p3), %v1776_v5  ;;  %1741 = vmatprep.subr.bf16.mxu1 (!%p244_p3), %v1740_v13  ;;  %v1744_v18 = vpack.c.bf16 (!%p244_p3), %v1355_v15, %v1354_v14  ;;  %v1357_v25 = vld [vmem:[%s2471_s2 + $0xa8] sm:$0xff] (!%p244_p3)  ;;  %v1358_v28 = vld [vmem:[%s2471_s2 + $0xb0] sm:$0xff] (!%p244_p3)  ;;  %v1359_v29 = vld [vmem:[%s2471_s2 + $0xb8] sm:$0xff] (!%p244_p3)  ;;  %v1788_v30 = vpack.c.bf16 (!%p244_p3), %v339_v23, %v338_v20 }
   0xf   : > { %1743 = vmatpush3.bf16.msra.mxu1 (!%p244_p3), %v1740_v13  ;;  %v1748_v26 = vpack.c.bf16 (!%p244_p3), %v1357_v25, %v1356_v24  ;;  %v340_v31 = vld [vmem:[%s2471_s2 + $0x50] sm:$0xff] (!%p244_p3)  ;;  %v341_v32 = vld [vmem:[%s2471_s2 + $0x58] sm:$0xff] (!%p244_p3)  ;;  %v1752_v33 = vpack.c.bf16 (!%p244_p3), %v1359_v29, %v1358_v28  ;;  %v1360_v34 = vld [vmem:[%s2471_s2 + $0xc0] sm:$0xff] (!%p244_p3) }
  0x10   : > { %s2487_s22 = smov (!%p286_p5, %s1967_s22), 1  ;;  %1745 = vmatprep.subr.bf16.mxu1 %v1744_v18  ;;  %v1361_v35 = vld [vmem:[%s2471_s2 + $0xc8] sm:$0xff]  ;;  %v1792_v36 = vpack.c.bf16 %v341_v32, %v340_v31  ;;  %v342_v37 = vld [vmem:[%s2471_s2 + $0x60] sm:$0xff]  ;;  %v1362_v40 = vld [vmem:[%s2471_s2 + $0xd0] sm:$0xff]  ;;  %s2489_s9 = smov (!%p294_p6, %s1345_s9), 63 }
  0x11   : > { %s1900_s16 = smul.u32 520, %s2487_s22  ;;  %1779 = vmatpush3.bf16.msra.mxu0 %v1776_v5  ;;  %v343_v38 = vld [vmem:[%s2471_s2 + $0x68] sm:$0xff]  ;;  %v1756_v39 = vpack.c.bf16 %v1361_v35, %v1360_v34  ;;  %v1363_v41 = vld [vmem:[%s2471_s2 + $0xd8] sm:$0xff]  ;;  %v344_v43 = vld [vmem:[%s2471_s2 + $0x70] sm:$0xff]  ;;  %s1346_s10 = sshll.u32 %s2487_s22, 6 }
  0x12   : > { %1781 = vmatprep.subr.bf16.mxu0 %v1780_v8  ;;  %v1796_v42 = vpack.c.bf16 %v343_v38, %v342_v37  ;;  %v345_v44 = vld [vmem:[%s2471_s2 + $0x78] sm:$0xff]  ;;  %v1760_v45 = vpack.c.bf16 %v1363_v41, %v1362_v40  ;;  %v1364_v46 = vld [vmem:[%s2471_s2 + $0xe0] sm:$0xff]  ;;  %v1365_v47 = vld [vmem:[%s2471_s2 + $0xe8] sm:$0xff] }
  0x13   : > { %s290_s11 = scalar_lea.vmem %s2469_s0, %s1900_s16  ;;  %1747 = vmatpush3.bf16.msra.mxu1 %v1744_v18  ;;  %v1800_v48 = vpack.c.bf16 %v345_v44, %v344_v43  ;;  %v1368_v49 = vld [vmem:[%s2471_s2 + $0x100] sm:$0xff]  ;;  %v1369_v50 = vld [vmem:[%s2471_s2 + $0x108] sm:$0xff]  ;;  %v1764_v51 = vpack.c.bf16 %v1365_v47, %v1364_v46  ;;  %v1366_v52 = vld [vmem:[%s2471_s2 + $0xf0] sm:$0xff] }
  0x14   : > { %s2088_s14 = scalar_lea.vmem %s290_s11, %s1351_s17  ;;  %1749 = vmatprep.subr.bf16.mxu1 %v1748_v26  ;;  %v1367_v53 = vld [vmem:[%s2471_s2 + $0xf8] sm:$0xff]  ;;  %v1804_v54 = vpack.c.bf16 %v1369_v50, %v1368_v49  ;;  %v1370_v55 = vld [vmem:[%s2471_s2 + $0x110] sm:$0xff]  ;;  %v971_v58 = vld [vmem:[%s2473_s4] sm:$0xff]  ;;  %s297_s11 = sadd.s32 %s1346_s10, %s2489_s9 }
  0x15   : > { %v2094_v16 = vld [vmem:[%s2088_s14] sm:$0xff]  ;;  %v2097_v17 = vld [vmem:[%s2088_s14 + $0x8] sm:$0xff]  ;;  %1783 = vmatpush3.bf16.msra.mxu0 %v1780_v8  ;;  %v1371_v56 = vld [vmem:[%s2471_s2 + $0x118] sm:$0xff]  ;;  %v1768_v57 = vpack.c.bf16 %v1367_v53, %v1366_v52  ;;  %s1347_s12 = sshll.u32 %s297_s11, 3 }
  0x16   : > { %v381_v21 = vrot.slane %v2094_v16, 1  ;;  %1604 = vmatprep.mubr.f32.mxu0 %v2094_v16  ;;  %v382_v22 = vrot.slane %v2097_v17, 1  ;;  %1785 = vmatprep.subr.bf16.mxu0 %v1784_v19  ;;  %v972_v59 = vld [vmem:[%s2473_s4 + $0x8] sm:$0xff]  ;;  %v2184_v60 = vld [vmem:[%s2088_s14 + $0x10] sm:$0xff]  ;;  %v1808_v61 = vpack.c.bf16 %v1371_v56, %v1370_v55  ;;  %v2188_v63 = vld [vmem:[%s2088_s14 + $0x18] sm:$0xff]  ;;  %s2394_s18 = scalar_lea.vmem %s2470_s1, %s1347_s12  ;;  %s2409_s17 = scalar_lea.vmem %s2475_s6, %s1347_s12 }
  0x17   : > { %1751 = vmatpush3.bf16.msra.mxu1 %v1748_v26  ;;  %v384_v62 = vrot.slane %v2184_v60, 1  ;;  %v1372_v0 = vld [vmem:[%s2471_s2 + $0x120] sm:$0xff]  ;;  %v1373_v1 = vld [vmem:[%s2471_s2 + $0x128] sm:$0xff]  ;;  %v386_v2 = vrot.slane %v2188_v63, 1  ;;  %v1836_v3 = vpack.c.bf16 %v972_v59, %v971_v58  ;;  %v973_v4 = vld [vmem:[%s2473_s4 + $0x10] sm:$0xff] }
  0x18   : > { %v383_v27 = vsel %vm380_vm0, %v381_v21, %v382_v22  ;;  %1753 = vmatprep.subr.bf16.mxu1 %v1752_v33  ;;  %v974_v5 = vld [vmem:[%s2473_s4 + $0x18] sm:$0xff]  ;;  %v2206_v6 = vld [vmem:[%s2088_s14 + $0x20] sm:$0xff]  ;;  %v1812_v7 = vpack.c.bf16 %v1373_v1, %v1372_v0  ;;  %v2210_v9 = vld [vmem:[%s2088_s14 + $0x28] sm:$0xff] }
  0x19   : > { %1548 = vmatprep.mubr.f32.mxu1 %v383_v27  ;;  %1787 = vmatpush3.bf16.msra.mxu0 %v1784_v19  ;;  %v388_v8 = vrot.slane %v2206_v6, 1  ;;  %v1374_v10 = vld [vmem:[%s2471_s2 + $0x130] sm:$0xff]  ;;  %v1375_v11 = vld [vmem:[%s2471_s2 + $0x138] sm:$0xff]  ;;  %v385_v12 = vsel %vm380_vm0, %v382_v22, %v384_v62  ;;  %v390_v13 = vrot.slane %v2210_v9, 1  ;;  %v387_v14 = vsel %vm380_vm0, %v384_v62, %v386_v2  ;;  %v975_v18 = vld [vmem:[%s2473_s4 + $0x20] sm:$0xff] }
  0x1a   : > { %1789 = vmatprep.subr.bf16.mxu0 %v1788_v30  ;;  %v1840_v15 = vpack.c.bf16 %v974_v5, %v973_v4  ;;  %v976_v19 = vld [vmem:[%s2473_s4 + $0x28] sm:$0xff]  ;;  %v2232_v20 = vld [vmem:[%s2088_s14 + $0x30] sm:$0xff]  ;;  %v1816_v21 = vpack.c.bf16 %v1375_v11, %v1374_v10  ;;  %v2236_v23 = vld [vmem:[%s2088_s14 + $0x38] sm:$0xff] }
  0x1b   : > { %1755 = vmatpush3.bf16.msra.mxu1 %v1752_v33  ;;  %v392_v22 = vrot.slane %v2232_v20, 1  ;;  %v1376_v24 = vld [vmem:[%s2471_s2 + $0x140] sm:$0xff]  ;;  %v1377_v25 = vld [vmem:[%s2471_s2 + $0x148] sm:$0xff]  ;;  %v389_v26 = vsel %vm380_vm0, %v386_v2, %v388_v8  ;;  %v394_v27 = vrot.slane %v2236_v23, 1  ;;  %v391_v28 = vsel %vm380_vm0, %v388_v8, %v390_v13  ;;  %v978_v31 = vld [vmem:[%s2473_s4 + $0x38] sm:$0xff] }
  0x1c   : > { %1757 = vmatprep.subr.bf16.mxu1 %v1756_v39  ;;  %v1844_v29 = vpack.c.bf16 %v976_v19, %v975_v18  ;;  %v2256_v32 = vld [vmem:[%s2088_s14 + $0x40] sm:$0xff]  ;;  %v1820_v33 = vpack.c.bf16 %v1377_v25, %v1376_v24  ;;  %v2260_v35 = vld [vmem:[%s2088_s14 + $0x48] sm:$0xff]  ;;  %v1379_v37 = vld [vmem:[%s2471_s2 + $0x158] sm:$0xff]  ;;  %v739_v8 = vrot.slane %v2097_v17, 2  ;;  %v741_v19 = vrot.slane %v2184_v60, 2 }
  0x1d   : > { %1791 = vmatpush3.bf16.msra.mxu0 %v1788_v30  ;;  %v977_v30 = vld [vmem:[%s2473_s4 + $0x30] sm:$0xff]  ;;  %v396_v34 = vrot.slane %v2256_v32, 1  ;;  %v393_v38 = vsel %vm380_vm0, %v390_v13, %v392_v22  ;;  %v395_v40 = vsel %vm380_vm0, %v392_v22, %v394_v27  ;;  %v980_v43 = vld [vmem:[%s2473_s4 + $0x48] sm:$0xff]  ;;  %v2284_v47 = vld [vmem:[%s2088_s14 + $0x58] sm:$0xff] }
  0x1e   : > { %1793 = vmatprep.subr.bf16.mxu0 %v1792_v36  ;;  %v1848_v41 = vpack.c.bf16 %v978_v31, %v977_v30  ;;  %v2280_v44 = vld [vmem:[%s2088_s14 + $0x50] sm:$0xff]  ;;  %v1381_v49 = vld [vmem:[%s2471_s2 + $0x168] sm:$0xff]  ;;  %v982_v55 = vld [vmem:[%s2473_s4 + $0x58] sm:$0xff]  ;;  %v749_v30 = vrot.slane %v2232_v20, 2 }
  0x1f   : > { %1759 = vmatpush3.bf16.msra.mxu1 %v1756_v39  ;;  %v398_v39 = vrot.slane %v2260_v35, 1  ;;  %v400_v46 = vrot.slane %v2280_v44, 1  ;;  %v397_v50 = vsel %vm380_vm0, %v394_v27, %v396_v34  ;;  %v2304_v56 = vld [vmem:[%s2088_s14 + $0x60] sm:$0xff]  ;;  %v2308_v59 = vld [vmem:[%s2088_s14 + $0x68] sm:$0xff]  ;;  %v1383_v62 = vld [vmem:[%s2471_s2 + $0x178] sm:$0xff]  ;;  %v747_v27 = vrot.slane %v2210_v9, 2 }
  0x20   : > { %1761 = vmatprep.subr.bf16.mxu1 %v1760_v45  ;;  %v404_v58 = vrot.slane %v2304_v56, 1  ;;  %v406_v1 = vrot.slane %v2308_v59, 1  ;;  %v983_v4 = vld [vmem:[%s2473_s4 + $0x60] sm:$0xff]  ;;  %v984_v5 = vld [vmem:[%s2473_s4 + $0x68] sm:$0xff]  ;;  %v2330_v10 = vld [vmem:[%s2088_s14 + $0x70] sm:$0xff] }
  0x21   : > { %1795 = vmatpush3.bf16.msra.mxu0 %v1792_v36  ;;  %v1378_v36 = vld [vmem:[%s2471_s2 + $0x150] sm:$0xff]  ;;  %v399_v52 = vsel %vm380_vm0, %v396_v34, %v398_v39  ;;  %v401_v0 = vsel %vm380_vm0, %v398_v39, %v400_v46  ;;  %v2334_v13 = vld [vmem:[%s2088_s14 + $0x78] sm:$0xff]  ;;  %v1860_v18 = vpack.c.bf16 %v984_v5, %v983_v4  ;;  %v750_v34 = vsel %vm737_vm1, %v747_v27, %v749_v30 }
  0x22   : > { %1797 = vmatprep.subr.bf16.mxu0 %v1796_v42 }
  0x23   : > { %1763 = vmatpush3.bf16.msra.mxu1 %v1760_v45  ;;  %v1824_v45 = vpack.c.bf16 %v1379_v37, %v1378_v36  ;;  %v755_v36 = vrot.slane %v2260_v35, 2 }
  0x24   : > { %1765 = vmatprep.subr.bf16.mxu1 %v1764_v51 }
  0x25   : > { %1799 = vmatpush3.bf16.msra.mxu0 %v1796_v42  ;;  %v979_v42 = vld [vmem:[%s2473_s4 + $0x40] sm:$0xff] }
  0x26   : > { %1801 = vmatprep.subr.bf16.mxu0 %v1800_v48  ;;  %v1852_v53 = vpack.c.bf16 %v980_v43, %v979_v42  ;;  %v765_v42 = vrot.slane %v2330_v10, 2 }
  0x27   : > { %1767 = vmatpush3.bf16.msra.mxu1 %v1764_v51  ;;  %v402_v51 = vrot.slane %v2284_v47, 1 }
  0x28   : > { %1769 = vmatprep.subr.bf16.mxu1 %v1768_v57 }
  0x29   : > { %1803 = vmatpush3.bf16.msra.mxu0 %v1800_v48  ;;  %v1380_v48 = vld [vmem:[%s2471_s2 + $0x160] sm:$0xff]  ;;  %v403_v2 = vsel %vm380_vm0, %v400_v46, %v402_v51 }
  0x2a   : > { %1805 = vmatprep.subr.bf16.mxu0 %v1804_v54 }
  0x2b   : > { %1771 = vmatpush3.bf16.msra.mxu1 %v1768_v57  ;;  %v1828_v57 = vpack.c.bf16 %v1381_v49, %v1380_v48 }
  0x2c   : > { %1605 = vmatmul.mubr.f32.vlgmr.msra.gmra.mrb[0].mxu0 %v2097_v17  ;;  %1837 = vmatprep.subr.bf16.mxu1 %v1836_v3  ;;  %v407_v17 = vsel %vm380_vm0, %v404_v58, %v406_v1 }
  0x2d   : > { %1807 = vmatpush3.bf16.msra.mxu0 %v1804_v54  ;;  %1607 = vmatprep.mubr.f32.mxu0 %v2184_v60  ;;  %v981_v54 = vld [vmem:[%s2473_s4 + $0x50] sm:$0xff]  ;;  %v745_v60 = vrot.slane %v2206_v6, 2 }
  0x2e   : > { %1809 = vmatprep.subr.bf16.mxu0 %v1808_v61  ;;  %1549 = vmatmul.mubr.f32.vlgmr.msra.gmra.mrb[0].mxu1 %v385_v12  ;;  %v408_v12 = vrot.slane %v2330_v10, 1 }
  0x2f   : > { %1551 = vmatprep.mubr.f32.mxu1 %v387_v14  ;;  %1839 = vmatpush3.bf16.msra.mxu1 %v1836_v3  ;;  %v1856_v3 = vpack.c.bf16 %v982_v55, %v981_v54  ;;  %v405_v14 = vsel %vm380_vm0, %v402_v51, %v404_v58  ;;  %v986_v51 = vld [vmem:[%s2473_s4 + $0x78] sm:$0xff] }
  0x30   : > { %1608 = vmatmul.mubr.f32.gmra.mrb[2].mxu0 %v2188_v63  ;;  %1841 = vmatprep.subr.bf16.mxu1 %v1840_v15  ;;  %v409_v24 = vsel %vm380_vm0, %v406_v1, %v408_v12 }
  0x31   : > { %1811 = vmatpush3.bf16.msra.mxu0 %v1808_v61  ;;  %1610 = vmatprep.mubr.f32.mxu0 %v2206_v6  ;;  %v1382_v61 = vld [vmem:[%s2471_s2 + $0x170] sm:$0xff]  ;;  %v751_v6 = vrot.slane %v2236_v23, 2 }
  0x32   : > { %1813 = vmatprep.subr.bf16.mxu0 %v1812_v7  ;;  %1552 = vmatmul.mubr.f32.gmra.mrb[2].mxu1 %v389_v26  ;;  %v1832_v11 = vpack.c.bf16 %v1383_v62, %v1382_v61 }
  0x33   : > { %1554 = vmatprep.mubr.f32.mxu1 %v391_v28  ;;  %1843 = vmatpush3.bf16.msra.mxu1 %v1840_v15  ;;  %v2341_v15 = vld [vmem:[%s2088_s14 + $0x80] sm:$0x3]  ;;  %v752_v37 = vsel %vm737_vm1, %v749_v30, %v751_v6 }
  0x34   : > { %1611 = vmatmul.mubr.f32.gmra.mrb[4].mxu0 %v2210_v9  ;;  %1845 = vmatprep.subr.bf16.mxu1 %v1844_v29  ;;  %v412_v25 = vrot.slane %v2341_v15, 1  ;;  %v753_v9 = vrot.slane %v2256_v32, 2 }
  0x35   : > { %1815 = vmatpush3.bf16.msra.mxu0 %v1812_v7  ;;  %1613 = vmatprep.mubr.f32.mxu0 %v2232_v20  ;;  %v738_v7 = vrot.slane %v2094_v16, 2  ;;  %v410_v16 = vrot.slane %v2334_v13, 1  ;;  %v757_v20 = vrot.slane %v2280_v44, 2 }
  0x36   : > { %1817 = vmatprep.subr.bf16.mxu0 %v1816_v21  ;;  %1555 = vmatmul.mubr.f32.gmra.mrb[4].mxu1 %v393_v38  ;;  %v754_v38 = vsel %vm737_vm1, %v751_v6, %v753_v9  ;;  %v756_v39 = vsel %vm737_vm1, %v753_v9, %v755_v36 }
  0x37   : > { %1557 = vmatprep.mubr.f32.mxu1 %v395_v40  ;;  %1847 = vmatpush3.bf16.msra.mxu1 %v1844_v29  ;;  %v740_v22 = vsel %vm737_vm1, %v738_v7, %v739_v8  ;;  %v411_v26 = vsel %vm380_vm0, %v408_v12, %v410_v16  ;;  %v413_v29 = vsel %vm380_vm0, %v410_v16, %v412_v25 }
  0x38   : > { %1614 = vmatmul.mubr.f32.gmra.mrb[6].mxu0 %v2236_v23  ;;  %1849 = vmatprep.subr.bf16.mxu1 %v1848_v41  ;;  %v759_v23 = vrot.slane %v2284_v47, 2  ;;  %v758_v40 = vsel %vm737_vm1, %v755_v36, %v757_v20 }
  0x39   : > { %1819 = vmatpush3.bf16.msra.mxu0 %v1816_v21  ;;  %1616 = vmatprep.mubr.f32.mxu0 %v2256_v32  ;;  %v743_v21 = vrot.slane %v2188_v63, 2  ;;  %v742_v63 = vsel %vm737_vm1, %v739_v8, %v741_v19  ;;  %v761_v32 = vrot.slane %v2304_v56, 2  ;;  %v1384_v8 = vld [vmem:[%s2472_s3] ss:$0 sm:$0xff] }
  0x3a   : > { %1821 = vmatprep.subr.bf16.mxu0 %v1820_v33  ;;  %1558 = vmatmul.mubr.f32.gmra.mrb[6].mxu1 %v397_v50  ;;  %v985_v50 = vld [vmem:[%s2473_s4 + $0x70] sm:$0xff] }
  0x3b   : > { %1560 = vmatprep.mubr.f32.mxu1 %v399_v52  ;;  %1851 = vmatpush3.bf16.msra.mxu1 %v1848_v41  ;;  %v744_v28 = vsel %vm737_vm1, %v741_v19, %v743_v21  ;;  %v746_v31 = vsel %vm737_vm1, %v743_v21, %v745_v60  ;;  %v760_v41 = vsel %vm737_vm1, %v757_v20, %v759_v23 }
  0x3c   : > { %1617 = vmatmul.mubr.f32.gmra.mrb[8].mxu0 %v2260_v35  ;;  %1853 = vmatprep.subr.bf16.mxu1 %v1852_v53  ;;  %v763_v35 = vrot.slane %v2308_v59, 2  ;;  %v762_v43 = vsel %vm737_vm1, %v759_v23, %v761_v32  ;;  %v1864_v52 = vpack.c.bf16 %v986_v51, %v985_v50 }
  0x3d   : > { %1823 = vmatpush3.bf16.msra.mxu0 %v1820_v33  ;;  %1619 = vmatprep.mubr.f32.mxu0 %v2280_v44  ;;  %v748_v33 = vsel %vm737_vm1, %v745_v60, %v747_v27  ;;  %v767_v44 = vrot.slane %v2334_v13, 2 }
  0x3e   : > { %1825 = vmatprep.subr.bf16.mxu0 %v1824_v45  ;;  %1561 = vmatmul.mubr.f32.gmra.mrb[8].mxu1 %v401_v0  ;;  %v766_v46 = vsel %vm737_vm1, %v763_v35, %v765_v42 }
  0x3f   : > { %1563 = vmatprep.mubr.f32.mxu1 %v403_v2  ;;  %1855 = vmatpush3.bf16.msra.mxu1 %v1852_v53  ;;  %v768_v48 = vsel %vm737_vm1, %v765_v42, %v767_v44 }
  0x40   : > { %1620 = vmatmul.mubr.f32.gmra.mrb[10].mxu0 %v2284_v47  ;;  %1857 = vmatprep.subr.bf16.mxu1 %v1856_v3  ;;  %v769_v47 = vrot.slane %v2341_v15, 2 }
  0x41   : > { %1827 = vmatpush3.bf16.msra.mxu0 %v1824_v45  ;;  %1622 = vmatprep.mubr.f32.mxu0 %v2304_v56  ;;  %v764_v45 = vsel %vm737_vm1, %v761_v32, %v763_v35 }
  0x42   : > { %1829 = vmatprep.subr.bf16.mxu0 %v1828_v57  ;;  %1564 = vmatmul.mubr.f32.gmra.mrb[10].mxu1 %v405_v14  ;;  %v770_v49 = vsel %vm737_vm1, %v767_v44, %v769_v47 }
  0x43   : > { %1566 = vmatprep.mubr.f32.mxu1 %v407_v17  ;;  %1859 = vmatpush3.bf16.msra.mxu1 %v1856_v3 }
  0x44   : > { %1623 = vmatmul.mubr.f32.gmra.mrb[12].mxu0 %v2308_v59  ;;  %1861 = vmatprep.subr.bf16.mxu1 %v1860_v18 }
  0x45   : > { %1831 = vmatpush3.bf16.msra.mxu0 %v1828_v57  ;;  %1625 = vmatprep.mubr.f32.mxu0 %v2330_v10 }
  0x46   : > { %1833 = vmatprep.subr.bf16.mxu0 %v1832_v11  ;;  %1567 = vmatmul.mubr.f32.gmra.mrb[12].mxu1 %v409_v24 }
  0x47   : > { %1569 = vmatprep.mubr.f32.mxu1 %v411_v26  ;;  %1863 = vmatpush3.bf16.msra.mxu1 %v1860_v18 }
  0x48   : > { %1626 = vmatmul.mubr.f32.gmra.mrb[14].mxu0 %v2334_v13  ;;  %1865 = vmatprep.subr.bf16.mxu1 %v1864_v52 }
  0x49   : > { %1835 = vmatpush3.bf16.msra.mxu0 %v1832_v11  ;;  %1660 = vmatprep.mubr.f32.mxu0 %v740_v22 }
  0x4a   : > { %1570 = vmatmul.mubr.f32.gmra.mrb[14].mxu1 %v413_v29 }
  0x4b   : > { %1867 = vmatpush3.bf16.msra.mxu1 %v1864_v52 }
  0x4c   : > { %1661 = vmatmul.mubr.f32.vlgmr.msra.gmra.mrb[0].mxu0 %v742_v63 }
  0x4d   : > { %1663 = vmatprep.mubr.f32.mxu0 %v744_v28 }
  0x50   : > { %1664 = vmatmul.mubr.f32.gmra.mrb[2].mxu0 %v746_v31 }
  0x51   : > { %1666 = vmatprep.mubr.f32.mxu0 %v748_v33 }
  0x54   : > { %1667 = vmatmul.mubr.f32.gmra.mrb[4].mxu0 %v750_v34 }
  0x55   : > { %1669 = vmatprep.mubr.f32.mxu0 %v752_v37 }
  0x58   : > { %1670 = vmatmul.mubr.f32.gmra.mrb[6].mxu0 %v754_v38 }
  0x59   : > { %1672 = vmatprep.mubr.f32.mxu0 %v756_v39 }
  0x5c   : > { %1673 = vmatmul.mubr.f32.gmra.mrb[8].mxu0 %v758_v40 }
  0x5d   : > { %1675 = vmatprep.mubr.f32.mxu0 %v760_v41 }
  0x60   : > { %1676 = vmatmul.mubr.f32.gmra.mrb[10].mxu0 %v762_v43 }
  0x61   : > { %1678 = vmatprep.mubr.f32.mxu0 %v764_v45 }
  0x64   : > { %1679 = vmatmul.mubr.f32.gmra.mrb[12].mxu0 %v766_v46 }
  0x65   : > { %1681 = vmatprep.mubr.f32.mxu0 %v768_v48 }
  0x68   : > { %1682 = vmatmul.mubr.f32.gmra.mrb[14].mxu0 %v770_v49 }
 0x101   : > { %v1550_v53 = vpop.f32.mrb[0].mxu1 }
 0x102   : > { %v496_v54 = vpop.f32.mrb[1].mxu1 }
 0x105   : > { %v1553_v55 = vpop.f32.mrb[2].mxu1 }
 0x106   : > { %v506_v56 = vpop.f32.mrb[3].mxu1 }
 0x109   : > { %v1556_v57 = vpop.f32.mrb[4].mxu1 }
 0x10a   : > { %v516_v58 = vpop.f32.mrb[5].mxu1 }
 0x10d   : > { %v1559_v59 = vpop.f32.mrb[6].mxu1 }
 0x10e   : > { %v526_v61 = vpop.f32.mrb[7].mxu1 }
 0x111   : > { %v1562_v62 = vpop.f32.mrb[8].mxu1 }
 0x112   : > { %v536_v0 = vpop.f32.mrb[9].mxu1 }
 0x115   : > { %v1565_v1 = vpop.f32.mrb[10].mxu1 }
 0x116   : > { %v546_v2 = vpop.f32.mrb[11].mxu1 }
 0x119   : > { %v1568_v3 = vpop.f32.mrb[12].mxu1 }
 0x11a   : > { %v556_v4 = vpop.f32.mrb[13].mxu1 }
 0x11d   : > { %v1571_v12 = vpop.f32.mrb[14].mxu1 }
 0x11e   : > { %v566_v13 = vpop.f32.mrb[15].mxu1 }
 0x11f   : > { %v1662_v5 = vpop.f32.mrb[0].mxu0 }
 0x120   : > { %v1868_v7 = vadd.f32 %v1662_v5, %v1550_v53  ;;  %v853_v10 = vpop.f32.mrb[1].mxu0 }
 0x121   : > { %v1869_v11 = vadd.f32 %v853_v10, %v496_v54  ;;  %v2399_v54 = vld [vmem:[%s2474_s5] ss:$0 sm:$0xff] }
 0x122   : > { %v956_v17 = vadd.f32 %v1868_v7, %v1384_v8  ;;  %v1141_v7 = vld [vmem:[%s2394_s18 + $0x10] sm:$0xff] }
 0x123   : > { %v955_v14 = vadd.f32 %v1869_v11, %v1384_v8  ;;  %v1665_v16 = vpop.f32.mrb[2].mxu0 }
 0x124   : > { %v1870_v15 = vadd.f32 %v1665_v16, %v1553_v55  ;;  %v863_v18 = vpop.f32.mrb[3].mxu0 }
 0x125   : > { %v1871_v19 = vadd.f32 %v863_v18, %v506_v56  ;;  %1716 = vmatprep.mubr.f32.mxu1 %v955_v14  ;;  %v1140_v56 = vld [vmem:[%s2394_s18 + $0x8] sm:$0xff] }
 0x126   : > { %1717 = vmatmul.mubr.f32.vlgmr.msra.gmra.mrb[16].mxu1 %v956_v17  ;;  %v958_v24 = vadd.f32 %v1870_v15, %v1384_v8  ;;  %v1144_v17 = vld [vmem:[%s2394_s18 + $0x28] sm:$0xff] }
 0x127   : > { %v957_v21 = vadd.f32 %v1871_v19, %v1384_v8  ;;  %v1668_v22 = vpop.f32.mrb[4].mxu0 }
 0x128   : > { %v1872_v25 = vadd.f32 %v1668_v22, %v1556_v57  ;;  %v873_v26 = vpop.f32.mrb[5].mxu0 }
 0x129   : > { %v1873_v60 = vadd.f32 %v873_v26, %v516_v58  ;;  %1719 = vmatprep.mubr.f32.mxu1 %v957_v21  ;;  %v1143_v21 = vld [vmem:[%s2394_s18 + $0x20] sm:$0xff] }
 0x12a   : > { %1720 = vmatmul.mubr.f32.gmra.mrb[18].mxu1 %v958_v24  ;;  %v960_v28 = vadd.f32 %v1872_v25, %v1384_v8 }
 0x12b   : > { %v959_v63 = vadd.f32 %v1873_v60, %v1384_v8  ;;  %v1671_v27 = vpop.f32.mrb[6].mxu0 }
 0x12c   : > { %v1874_v29 = vadd.f32 %v1671_v27, %v1559_v59  ;;  %v883_v30 = vpop.f32.mrb[7].mxu0  ;;  %v1139_v59 = vld [vmem:[%s2394_s18] sm:$0xff] }
 0x12d   : > { %v1875_v31 = vadd.f32 %v883_v30, %v526_v61  ;;  %1722 = vmatprep.mubr.f32.mxu1 %v959_v63 }
 0x12e   : > { %1723 = vmatmul.mubr.f32.gmra.mrb[20].mxu1 %v960_v28  ;;  %v962_v9 = vadd.f32 %v1874_v29, %v1384_v8  ;;  %v1146_v28 = vld [vmem:[%s2394_s18 + $0x38] sm:$0xff] }
 0x12f   : > { %v961_v6 = vadd.f32 %v1875_v31, %v1384_v8  ;;  %v1674_v33 = vpop.f32.mrb[8].mxu0 }
 0x130   : > { %v1876_v34 = vadd.f32 %v1674_v33, %v1562_v62  ;;  %v893_v36 = vpop.f32.mrb[9].mxu0 }
 0x131   : > { %v1877_v37 = vadd.f32 %v893_v36, %v536_v0  ;;  %1725 = vmatprep.mubr.f32.mxu1 %v961_v6  ;;  %v1145_v6 = vld [vmem:[%s2394_s18 + $0x30] sm:$0xff] }
 0x132   : > { %1726 = vmatmul.mubr.f32.gmra.mrb[22].mxu1 %v962_v9  ;;  %v964_v23 = vadd.f32 %v1876_v34, %v1384_v8 }
 0x133   : > { %v963_v20 = vadd.f32 %v1877_v37, %v1384_v8  ;;  %v1677_v38 = vpop.f32.mrb[10].mxu0 }
 0x134   : > { %v1878_v39 = vadd.f32 %v1677_v38, %v1565_v1  ;;  %v903_v32 = vpop.f32.mrb[11].mxu0 }
 0x135   : > { %v1879_v40 = vadd.f32 %v903_v32, %v546_v2  ;;  %1728 = vmatprep.mubr.f32.mxu1 %v963_v20  ;;  %v1142_v2 = vld [vmem:[%s2394_s18 + $0x18] sm:$0xff] }
 0x136   : > { %1729 = vmatmul.mubr.f32.gmra.mrb[24].mxu1 %v964_v23  ;;  %v966_v42 = vadd.f32 %v1878_v39, %v1384_v8  ;;  %v1148_v23 = vld [vmem:[%s2394_s18 + $0x48] sm:$0xff] }
 0x137   : > { %v965_v35 = vadd.f32 %v1879_v40, %v1384_v8  ;;  %v1680_v41 = vpop.f32.mrb[12].mxu0 }
 0x138   : > { %v1880_v43 = vadd.f32 %v1680_v41, %v1568_v3  ;;  %v913_v44 = vpop.f32.mrb[13].mxu0 }
 0x139   : > { %v1881_v45 = vadd.f32 %v913_v44, %v556_v4  ;;  %1731 = vmatprep.mubr.f32.mxu1 %v965_v35  ;;  %v1147_v35 = vld [vmem:[%s2394_s18 + $0x40] sm:$0xff] }
 0x13a   : > { %1732 = vmatmul.mubr.f32.gmra.mrb[26].mxu1 %v966_v42  ;;  %v968_v48 = vadd.f32 %v1880_v43, %v1384_v8 }
 0x13b   : > { %v967_v46 = vadd.f32 %v1881_v45, %v1384_v8  ;;  %v1683_v47 = vpop.f32.mrb[14].mxu0 }
 0x13c   : > { %v1882_v49 = vadd.f32 %v1683_v47, %v1571_v12  ;;  %v923_v50 = vpop.f32.mrb[15].mxu0 }
 0x13d   : > { %v1883_v51 = vadd.f32 %v923_v50, %v566_v13  ;;  %1734 = vmatprep.mubr.f32.mxu1 %v967_v46 }
 0x13e   : > { %1735 = vmatmul.mubr.f32.gmra.mrb[28].mxu1 %v968_v48  ;;  %v970_v53 = vadd.f32 %v1882_v49, %v1384_v8  ;;  %v1150_v48 = vld [vmem:[%s2394_s18 + $0x58] sm:$0xff] }
 0x13f   : > { %v969_v52 = vadd.f32 %v1883_v51, %v1384_v8 }
 0x141   : > { %1737 = vmatprep.mubr.f32.mxu1 %v969_v52  ;;  %v1149_v52 = vld [vmem:[%s2394_s18 + $0x50] sm:$0xff] }
 0x142   : > { %1738 = vmatmul.mubr.f32.gmra.mrb[30].mxu1 %v970_v53 }
 0x1f9   : > { %v1718_v55 = vpop.f32.mrb[16].mxu1 }
 0x1fa   : > { %v1066_v57 = vadd.f32 %v1718_v55, %v2399_v54  ;;  %v1060_v58 = vpop.f32.mrb[17].mxu1 }
 0x1fb   : > { %v1061_v61 = vadd.f32 %v2399_v54, %v1060_v58 }
 0x1fc   : > { %v1156_v62 = vadd.f32 %v1140_v56, %v1066_v57 }
 0x1fd   : > { %v1155_v0 = vadd.f32 %v1139_v59, %v1061_v61  ;;  %v1721_v1 = vpop.f32.mrb[18].mxu1 }
 0x1fe   : > { %vm1172_vm2 = vcmp.gt.f32.partialorder %v1156_v62, 0.0  ;;  %v1188_v3 = vmul.f32 0.2, %v1156_v62  ;;  %v1076_v4 = vadd.f32 %v1721_v1, %v2399_v54  ;;  %v1070_v5 = vpop.f32.mrb[19].mxu1 }
 0x1ff   : > { %vm1171_vm3 = vcmp.gt.f32.partialorder %v1155_v0, 0.0  ;;  %v1187_v8 = vmul.f32 0.2, %v1155_v0  ;;  %v1071_v10 = vadd.f32 %v2399_v54, %v1070_v5 }
 0x200   : > { %v1204_v11 = vsel %vm1172_vm2, %v1156_v62, %v1188_v3  ;;  %v1158_v12 = vadd.f32 %v1142_v2, %v1076_v4  ;;  %v1152_v62 = vld [vmem:[%s2394_s18 + $0x68] sm:$0xff]  ;;  %v1151_v3 = vld [vmem:[%s2394_s18 + $0x60] sm:$0xff] }
 0x201   : > { %1220 = vst [vmem:[%s2409_s17 + $0x8] sm:$0xff] %v1204_v11  ;;  %v1203_v13 = vsel %vm1171_vm3, %v1155_v0, %v1187_v8  ;;  %v1157_v14 = vadd.f32 %v1141_v7, %v1071_v10  ;;  %v1724_v16 = vpop.f32.mrb[20].mxu1 }
 0x202   : > { %1219 = vst [vmem:[%s2409_s17] sm:$0xff] %v1203_v13  ;;  %vm1174_vm4 = vcmp.gt.f32.partialorder %v1158_v12, 0.0  ;;  %v1190_v15 = vmul.f32 0.2, %v1158_v12  ;;  %v1086_v18 = vadd.f32 %v1724_v16, %v2399_v54  ;;  %v1080_v19 = vpop.f32.mrb[21].mxu1  ;;  %v1154_v13 = vld [vmem:[%s2394_s18 + $0x78] sm:$0xff] }
 0x203   : > { %vm1173_vm5 = vcmp.gt.f32.partialorder %v1157_v14, 0.0  ;;  %v1189_v22 = vmul.f32 0.2, %v1157_v14  ;;  %v1081_v24 = vadd.f32 %v2399_v54, %v1080_v19 }
 0x204   : > { %v1206_v25 = vsel %vm1174_vm4, %v1158_v12, %v1190_v15  ;;  %v1160_v26 = vadd.f32 %v1144_v17, %v1086_v18  ;;  %v1153_v15 = vld [vmem:[%s2394_s18 + $0x70] sm:$0xff] }
 0x205   : > { %1222 = vst [vmem:[%s2409_s17 + $0x18] sm:$0xff] %v1206_v25  ;;  %v1205_v60 = vsel %vm1173_vm5, %v1157_v14, %v1189_v22  ;;  %v1159_v63 = vadd.f32 %v1143_v21, %v1081_v24  ;;  %v1727_v27 = vpop.f32.mrb[22].mxu1 }
 0x206   : > { %1221 = vst [vmem:[%s2409_s17 + $0x10] sm:$0xff] %v1205_v60  ;;  %vm1176_vm6 = vcmp.gt.f32.partialorder %v1160_v26, 0.0  ;;  %v1192_v29 = vmul.f32 0.2, %v1160_v26  ;;  %v1096_v30 = vadd.f32 %v1727_v27, %v2399_v54  ;;  %v1090_v31 = vpop.f32.mrb[23].mxu1 }
 0x207   : > { %vm1175_vm7 = vcmp.gt.f32.partialorder %v1159_v63, 0.0  ;;  %v1191_v33 = vmul.f32 0.2, %v1159_v63  ;;  %v1091_v9 = vadd.f32 %v2399_v54, %v1090_v31 }
 0x208   : > { %v1208_v34 = vsel %vm1176_vm6, %v1160_v26, %v1192_v29  ;;  %v1162_v36 = vadd.f32 %v1146_v28, %v1096_v30 }
 0x209   : > { %1224 = vst [vmem:[%s2409_s17 + $0x28] sm:$0xff] %v1208_v34  ;;  %v1207_v37 = vsel %vm1175_vm7, %v1159_v63, %v1191_v33  ;;  %v1161_v20 = vadd.f32 %v1145_v6, %v1091_v9  ;;  %v1730_v38 = vpop.f32.mrb[24].mxu1 }
 0x20a   : > { %1223 = vst [vmem:[%s2409_s17 + $0x20] sm:$0xff] %v1207_v37  ;;  %vm1178_vm8 = vcmp.gt.f32.partialorder %v1162_v36, 0.0  ;;  %v1194_v39 = vmul.f32 0.2, %v1162_v36  ;;  %v1106_v32 = vadd.f32 %v1730_v38, %v2399_v54  ;;  %v1100_v40 = vpop.f32.mrb[25].mxu1 }
 0x20b   : > { %vm1177_vm9 = vcmp.gt.f32.partialorder %v1161_v20, 0.0  ;;  %v1193_v41 = vmul.f32 0.2, %v1161_v20  ;;  %v1101_v42 = vadd.f32 %v2399_v54, %v1100_v40 }
 0x20c   : > { %v1210_v43 = vsel %vm1178_vm8, %v1162_v36, %v1194_v39  ;;  %v1164_v44 = vadd.f32 %v1148_v23, %v1106_v32 }
 0x20d   : > { %1226 = vst [vmem:[%s2409_s17 + $0x38] sm:$0xff] %v1210_v43  ;;  %v1209_v45 = vsel %vm1177_vm9, %v1161_v20, %v1193_v41  ;;  %v1163_v46 = vadd.f32 %v1147_v35, %v1101_v42  ;;  %v1733_v47 = vpop.f32.mrb[26].mxu1 }
 0x20e   : > { %1225 = vst [vmem:[%s2409_s17 + $0x30] sm:$0xff] %v1209_v45  ;;  %vm1180_vm10 = vcmp.gt.f32.partialorder %v1164_v44, 0.0  ;;  %v1196_v49 = vmul.f32 0.2, %v1164_v44  ;;  %v1116_v50 = vadd.f32 %v1733_v47, %v2399_v54  ;;  %v1110_v51 = vpop.f32.mrb[27].mxu1 }
 0x20f   : > { %vm1179_vm11 = vcmp.gt.f32.partialorder %v1163_v46, 0.0  ;;  %v1195_v53 = vmul.f32 0.2, %v1163_v46  ;;  %v1111_v55 = vadd.f32 %v2399_v54, %v1110_v51 }
 0x210   : > { %v1212_v56 = vsel %vm1180_vm10, %v1164_v44, %v1196_v49  ;;  %v1166_v57 = vadd.f32 %v1150_v48, %v1116_v50 }
 0x211   : > { %1228 = vst [vmem:[%s2409_s17 + $0x48] sm:$0xff] %v1212_v56  ;;  %v1211_v58 = vsel %vm1179_vm11, %v1163_v46, %v1195_v53  ;;  %v1165_v59 = vadd.f32 %v1149_v52, %v1111_v55  ;;  %v1736_v61 = vpop.f32.mrb[28].mxu1 }
 0x212   : > { %1227 = vst [vmem:[%s2409_s17 + $0x40] sm:$0xff] %v1211_v58  ;;  %vm1182_vm12 = vcmp.gt.f32.partialorder %v1166_v57, 0.0  ;;  %v1198_v0 = vmul.f32 0.2, %v1166_v57  ;;  %v1126_v1 = vadd.f32 %v1736_v61, %v2399_v54  ;;  %v1120_v2 = vpop.f32.mrb[29].mxu1 }
 0x213   : > { %vm1181_vm13 = vcmp.gt.f32.partialorder %v1165_v59, 0.0  ;;  %v1197_v4 = vmul.f32 0.2, %v1165_v59  ;;  %v1121_v5 = vadd.f32 %v2399_v54, %v1120_v2 }
 0x214   : > { %v1214_v7 = vsel %vm1182_vm12, %v1166_v57, %v1198_v0  ;;  %v1168_v8 = vadd.f32 %v1152_v62, %v1126_v1 }
 0x215   : > { %1230 = vst [vmem:[%s2409_s17 + $0x58] sm:$0xff] %v1214_v7  ;;  %v1213_v10 = vsel %vm1181_vm13, %v1165_v59, %v1197_v4  ;;  %v1167_v11 = vadd.f32 %v1151_v3, %v1121_v5  ;;  %v1739_v12 = vpop.f32.mrb[30].mxu1 }
 0x216   : > { %1229 = vst [vmem:[%s2409_s17 + $0x50] sm:$0xff] %v1213_v10  ;;  %vm1184_vm14 = vcmp.gt.f32.partialorder %v1168_v8, 0.0  ;;  %v1200_v14 = vmul.f32 0.2, %v1168_v8  ;;  %v1136_v16 = vadd.f32 %v1739_v12, %v2399_v54  ;;  %v1130_v17 = vpop.f32.mrb[31].mxu1 }
 0x217   : > { %vm1183_vm15 = vcmp.gt.f32.partialorder %v1167_v11, 0.0  ;;  %v1199_v18 = vmul.f32 0.2, %v1167_v11  ;;  %v1131_v19 = vadd.f32 %v2399_v54, %v1130_v17 }
 0x218   : > { %v1216_v21 = vsel %vm1184_vm14, %v1168_v8, %v1200_v14  ;;  %v1170_v22 = vadd.f32 %v1154_v13, %v1136_v16 }
 0x219   : > { %1232 = vst [vmem:[%s2409_s17 + $0x68] sm:$0xff] %v1216_v21  ;;  %v1215_v24 = vsel %vm1183_vm15, %v1167_v11, %v1199_v18  ;;  %v1169_v25 = vadd.f32 %v1153_v15, %v1131_v19 }
 0x21a   : > { %1231 = vst [vmem:[%s2409_s17 + $0x60] sm:$0xff] %v1215_v24  ;;  %vm1186_vm0 = vcmp.gt.f32.partialorder %v1170_v22, 0.0  ;;  %v1202_v26 = vmul.f32 0.2, %v1170_v22 }
 0x21b   : > { %vm1185_vm1 = vcmp.gt.f32.partialorder %v1169_v25, 0.0  ;;  %v1201_v60 = vmul.f32 0.2, %v1169_v25 }
 0x21c   : > { %v1218_v63 = vsel %vm1186_vm0, %v1170_v22, %v1202_v26 }
 0x21d   : > { %1234 = vst [vmem:[%s2409_s17 + $0x78] sm:$0xff] %v1218_v63  ;;  %v1217_v27 = vsel %vm1185_vm1, %v1169_v25, %v1201_v60 }
 0x21e   : > { %1233 = vst [vmem:[%s2409_s17 + $0x70] sm:$0xff] %v1217_v27 }
 0x21f PF: > { %s16_s25 = sadd.s32 1, %s1979_s25   ;;  %s2476_s21 = smov %s1971_s23 }
 0x220   : > { %p13_p7 = scmp.ge.s32.totalorder %s16_s25, 10   ;;  %s2477_s22 = smov %s1975_s24 }
 0x221   : > { %s2478_s23 = smov %s2481_s26  ;;  %s2479_s24 = smov %s2485_s27 }
 0x222   :  { %15 = sbr.rel (!%p13_p7) target bundleno = 3 (0x3), region = 80 }

</bundles_post_ra>
